<compile_context>
chip_gen: v7x
topology: tpu7x:2x2x1
jax: 0.10.0
libtpu: 0.0.40
codegen_flags: <defaults>
</compile_context>

<pallas_src>
from functools import partial

import numpy as np
import jax
import jax.numpy as jnp
from jax.experimental import pallas as pl
from jax.experimental.pallas import tpu as pltpu

_LANES = 128                 # lane width of a vreg row
_TARGET_TILE_ROWS = 1024     # 1024x128 f32 tile = 512 KiB; 2 inputs x 2 bufs
                             # + accumulator ~2.5 MiB -> fits every chip's
                             # default scoped VMEM (v5e 16 MiB .. v7x 32 MiB)


def _wbce_kernel(pred_ref, gold_ref, out_ref, acc_ref, *,
                 scale, n_valid, needs_mask):
    i = pl.program_id(0)

    @pl.when(i == 0)
    def _():
        acc_ref[...] = jnp.zeros_like(acc_ref)

    # Cast to f32 inside the kernel; inputs may be stored narrower (bf16, ...).
    p = pred_ref[...].astype(jnp.float32)
    g = gold_ref[...].astype(jnp.float32)

    # loss = -gold*log(pred + 1e-8) - (1 - gold)*log(1 - pred + 1e-8)
    # (two-log form kept exactly so soft labels stay correct)
    loss = -g * jnp.log(p + 1e-8) - (1.0 - g) * jnp.log(1.0 - p + 1e-8)

    if needs_mask:
        # Zero out the padded tail / boundary-block garbage (cheap VPU work).
        tr, ln = loss.shape
        row = jax.lax.broadcasted_iota(jnp.int32, (tr, ln), 0)
        lane = jax.lax.broadcasted_iota(jnp.int32, (tr, ln), 1)
        flat_idx = (i * tr + row) * ln + lane
        loss = jnp.where(flat_idx < n_valid, loss, 0.0)

    # Vector accumulation only (VPU adds); the expensive cross-lane/sublane
    # reduction happens exactly once, in the final-step branch below.
    acc_ref[...] += loss

    @pl.when(i == pl.num_programs(0) - 1)
    def _():
        # scale = weight / (H * W)  ->  weight * mean(loss)
        out_ref[0, 0] = jnp.float32(scale) * jnp.sum(acc_ref[...])


def _flatten_to_slab(x2d, rows, lanes):
    """Row-major flatten of an [H, W] plane into a lane-dense (rows, lanes) slab."""
    flat = x2d.reshape(-1)
    pad = rows * lanes - flat.shape[0]
    if pad:
        flat = jnp.pad(flat, (0, pad))
    return flat.reshape(rows, lanes)


def weighted_cross_entropy_loss(pred, golds, typ, alpha_s, beta_s,
                                alpha_m, beta_m, alpha_f, beta_f):
    gold2d = golds[0][0, :, :]          # [H, W], native dtype (cast in-kernel)
    p2d = pred[0, 0, :, :]              # [H, W], native dtype (cast in-kernel)
    H, W = p2d.shape
    assert gold2d.shape == (H, W)

    # TODO(synk): persistence pairs (hp.getPairs) and gudhi Wasserstein
    # distances (loaded from .npy files) have no Pallas equivalent;
    # bd0 = bd1 = 0, so the weight reduces to 1.0 + alpha*0 + beta*0.
    bd0, bd1 = 0.0, 0.0
    if typ == 's':
        weight = 1.0 + alpha_s * bd0 + beta_s * bd1
    elif typ == 'm':
        weight = 1.0 + alpha_m * bd0 + beta_m * bd1
    else:
        weight = 1.0 + alpha_f * bd0 + beta_f * bd1

    # Lane-dense tiling of the flattened plane.
    n_valid = H * W
    rows = -(-n_valid // _LANES)                       # ceil(N / 128)
    tile_rows = rows if rows <= _TARGET_TILE_ROWS else _TARGET_TILE_ROWS
    num_tiles = -(-rows // tile_rows)                  # ceil(rows / tile_rows)
    needs_mask = (num_tiles * tile_rows * _LANES) != n_valid

    p_slab = _flatten_to_slab(p2d, rows, _LANES)
    g_slab = _flatten_to_slab(gold2d, rows, _LANES)

    kernel = partial(_wbce_kernel,
                     scale=float(weight) / float(n_valid),
                     n_valid=n_valid,
                     needs_mask=needs_mask)

    out = pl.pallas_call(
        kernel,
        out_shape=jax.ShapeDtypeStruct((1, 1), jnp.float32),
        grid_spec=pltpu.PrefetchScalarGridSpec(
            num_scalar_prefetch=0,
            grid=(num_tiles,),
            in_specs=[
                pl.BlockSpec((tile_rows, _LANES), lambda i: (i, 0)),  # pred slab
                pl.BlockSpec((tile_rows, _LANES), lambda i: (i, 0)),  # gold slab
            ],
            out_specs=pl.BlockSpec(memory_space=pltpu.SMEM),          # scalar out
            scratch_shapes=[pltpu.VMEM((tile_rows, _LANES), jnp.float32)],
        ),
        compiler_params=pltpu.CompilerParams(
            dimension_semantics=("arbitrary",)),   # reduction axis
    )(p_slab, g_slab)

    return out[0, 0]


if __name__ == "__main__":
    key = jax.random.PRNGKey(0)
    k_pred, k_gold = jax.random.split(key)

    B, C, H, W = 2, 1, 16, 16
    # predictions are probabilities in (0, 1)
    pred = jax.random.uniform(k_pred, (B, C, H, W), dtype=jnp.float32,
                              minval=0.01, maxval=0.99)
    # binary ground-truth mask, shape (1, H, W) so that golds[0][0, :, :] is [H, W]
    gold = (jax.random.uniform(k_gold, (1, H, W)) > 0.5).astype(jnp.float32)
    golds = [gold, None, None]   # entries 1/2 (diagram file paths) unused here

    typ = 's'
    alpha_s, beta_s = 0.5, 0.3
    alpha_m, beta_m = 0.4, 0.2
    alpha_f, beta_f = 0.1, 0.1

    result = weighted_cross_entropy_loss(pred, golds, typ, alpha_s, beta_s,
                                         alpha_m, beta_m, alpha_f, beta_f)
    result = jax.block_until_ready(result)

    # pure-JAX reference check
    g = gold[0]
    p = pred[0, 0]
    ref_loss = -g * jnp.log(p + 1e-8) - (1.0 - g) * jnp.log(1.0 - p + 1e-8)
    ref = 1.0 * jnp.mean(ref_loss)   # bd0 = bd1 = 0 -> weight = 1.0
    assert np.allclose(np.asarray(result), np.asarray(ref), rtol=1e-5, atol=1e-5), \
        (result, ref)

    print("KERNEL_OK")
</pallas_src>

<mosaic_0001>
module attributes {stable_mosaic.version = 11 : i64} {
  func.func @_wbce_kernel(%arg0: i32, %arg1: memref<2x128xf32, #tpu.memory_space<vmem>>, %arg2: memref<2x128xf32, #tpu.memory_space<vmem>>, %arg3: memref<1x1xf32, #tpu.memory_space<smem>>, %arg4: memref<2x128xf32, #tpu.memory_space<vmem>>) attributes {dimension_semantics = [#tpu.dimension_semantics<arbitrary>], iteration_bounds = array<i64: 1>, scalar_prefetch = 0 : i64, scratch_operands = 1 : i64, tpu.core_type = #tpu.core_type<tc>, window_params = [{transform_indices = @transform_0, window_bounds = array<i64: 2, 128>}, {transform_indices = @transform_1, window_bounds = array<i64: 2, 128>}, {transform_indices = @transform_2, window_bounds = array<i64: 1, 1>}]} {
    %c0_i32 = arith.constant 0 : i32
    %0 = arith.cmpi eq, %arg0, %c0_i32 : i32
    %1 = arith.extui %0 : i1 to i32
    %c0_i32_0 = arith.constant 0 : i32
    %2 = arith.cmpi ne, %1, %c0_i32_0 : i32
    scf.if %2 {
      %cst_14 = arith.constant 0.000000e+00 : f32
      %26 = vector.broadcast %cst_14 : f32 to vector<2x128xf32>
      %c0_15 = arith.constant 0 : index
      %c0_16 = arith.constant 0 : index
      %27 = vector.load %arg4[%c0_15, %c0_16] : memref<2x128xf32, #tpu.memory_space<vmem>>, vector<2x128xf32>
      tpu.vector_store %arg4[%c0_15, %c0_16], %26 {strides = array<i32>} : memref<2x128xf32, #tpu.memory_space<vmem>>, vector<2x128xf32>,
    } else {
    }
    %c0 = arith.constant 0 : index
    %c0_1 = arith.constant 0 : index
    %3 = vector.load %arg1[%c0, %c0_1] : memref<2x128xf32, #tpu.memory_space<vmem>>, vector<2x128xf32>
    %c0_2 = arith.constant 0 : index
    %c0_3 = arith.constant 0 : index
    %4 = vector.load %arg2[%c0_2, %c0_3] : memref<2x128xf32, #tpu.memory_space<vmem>>, vector<2x128xf32>
    %cst = arith.constant 0.000000e+00 : f32
    %5 = vector.broadcast %cst : f32 to vector<2x128xf32>
    %6 = arith.subf %5, %4 : vector<2x128xf32>
    %cst_4 = arith.constant 9.99999993E-9 : f32
    %7 = vector.broadcast %cst_4 : f32 to vector<2x128xf32>
    %8 = arith.addf %3, %7 : vector<2x128xf32>
    %9 = math.log %8 : vector<2x128xf32>
    %10 = arith.mulf %6, %9 : vector<2x128xf32>
    %cst_5 = arith.constant 1.000000e+00 : f32
    %11 = vector.broadcast %cst_5 : f32 to vector<2x128xf32>
    %12 = arith.subf %11, %4 : vector<2x128xf32>
    %cst_6 = arith.constant 1.000000e+00 : f32
    %13 = vector.broadcast %cst_6 : f32 to vector<2x128xf32>
    %14 = arith.subf %13, %3 : vector<2x128xf32>
    %cst_7 = arith.constant 9.99999993E-9 : f32
    %15 = vector.broadcast %cst_7 : f32 to vector<2x128xf32>
    %16 = arith.addf %14, %15 : vector<2x128xf32>
    %17 = math.log %16 : vector<2x128xf32>
    %18 = arith.mulf %12, %17 : vector<2x128xf32>
    %19 = arith.subf %10, %18 : vector<2x128xf32>
    %c0_8 = arith.constant 0 : index
    %c0_9 = arith.constant 0 : index
    %20 = vector.load %arg4[%c0_8, %c0_9] : memref<2x128xf32, #tpu.memory_space<vmem>>, vector<2x128xf32>
    %21 = arith.addf %20, %19 : vector<2x128xf32>
    %c0_10 = arith.constant 0 : index
    %c0_11 = arith.constant 0 : index
    %22 = vector.load %arg4[%c0_10, %c0_11] : memref<2x128xf32, #tpu.memory_space<vmem>>, vector<2x128xf32>
    tpu.vector_store %arg4[%c0_10, %c0_11], %21 {strides = array<i32>} : memref<2x128xf32, #tpu.memory_space<vmem>>, vector<2x128xf32>,
    %c0_i32_12 = arith.constant 0 : i32
    %23 = arith.cmpi eq, %arg0, %c0_i32_12 : i32
    %24 = arith.extui %23 : i1 to i32
    %c0_i32_13 = arith.constant 0 : i32
    %25 = arith.cmpi ne, %24, %c0_i32_13 : i32
    scf.if %25 {
      %c0_14 = arith.constant 0 : index
      %c0_15 = arith.constant 0 : index
      %26 = vector.load %arg4[%c0_14, %c0_15] : memref<2x128xf32, #tpu.memory_space<vmem>>, vector<2x128xf32>
      %27 = vector.shape_cast %26 : vector<2x128xf32> to vector<1x2x128xf32>
      %cst_16 = arith.constant dense<0.000000e+00> : vector<1xf32>
      %28 = vector.multi_reduction <add>, %27, %cst_16 [1, 2] : vector<1x2x128xf32> to vector<1xf32>
      %29 = vector.shape_cast %28 : vector<1xf32> to vector<1x1x1xf32>
      %30 = vector.extract %29[0, 0, 0] : f32 from vector<1x1x1xf32>
      %cst_17 = arith.constant 3.906250e-03 : f32
      %31 = arith.mulf %cst_17, %30 : f32
      %c0_18 = arith.constant 0 : index
      %c0_19 = arith.constant 0 : index
      %32 = memref.load %arg3[%c0_18, %c0_19] : memref<1x1xf32, #tpu.memory_space<smem>>
      memref.store %31, %arg3[%c0_18, %c0_19] : memref<1x1xf32, #tpu.memory_space<smem>>
    } else {
    }
    return
  }
  func.func @transform_0(%arg0: i32) -> (i32, i32) {
    %c0_i32 = arith.constant 0 : i32
    %c0_i32_0 = arith.constant 0 : i32
    return %arg0, %c0_i32 : i32, i32
  }
  func.func @transform_1(%arg0: i32) -> (i32, i32) {
    %c0_i32 = arith.constant 0 : i32
    %c0_i32_0 = arith.constant 0 : i32
    return %arg0, %c0_i32 : i32, i32
  }
  func.func @transform_2(%arg0: i32) -> (i32, i32) {
    %c0_i32 = arith.constant 0 : i32
    %c0_i32_0 = arith.constant 0 : i32
    %c0_i32_1 = arith.constant 0 : i32
    return %c0_i32, %c0_i32_0 : i32, i32
  }
}

</mosaic_0001>

<bundles_post_ra>
// kernel: tpu_custom_call.1
= control target key start
LH: loop header
LB: loop body
LE: loop exit
PB: predicated region body
PF: predicated region fallthrough
CT: control target
= control target key end

     0   :  { %7 = vsyncpa [#allocation4], 0  ;;  %s168_s0 = inlined_call_operand.hbm [shape: f32[2,128], index: 0, kind: input, shape index: {}]   ;;  %s169_s1 = inlined_call_operand.vmem [shape: f32[2,128], index: 1, kind: input, shape index: {}]   ;;  %s170_s2 = inlined_call_operand.hbm [shape: f32[1,1], index: 2, kind: output, shape index: {}]  }
   0x1   :  { %8 = vsyncpa [#allocation5], 0  ;;  %s123_s9 = smov [#allocation3]   ;;  %s87_s13 = scalar_lea.hbm %s168_s0, 32 }
   0x2   :  { %s15_s10 = sshll.u32 %s123_s9, 4  ;;  %p88_p0 = scmp.ne.s32.totalorder %s168_s0, %s87_s13  ;;  %s16_s10 = int_to_ptr.vmem [resolvable:$true] %s15_s10 }
   0x3   :  { %p91_p1 = scmp.lt.u32.totalorder %s87_s13, %s168_s0 }
   0x5   :  { %p93_p2 = pnand %p91_p1, %p88_p0 }
   0x7   :  { %96 = shalt.err (!%p93_p2)
}
   0x8   :  { %s97_s18 = scalar_lea.vmem %s16_s10, 32  ;;  %p102_p4 = scmp.lt.s32.totalorder %s16_s10, %s16_s10 }
   0x9   :  { %p98_p3 = scmp.ne.s32.totalorder %s16_s10, %s97_s18  ;;  %p103_p5 = scmp.lt.s32.totalorder %s97_s18, %s97_s18 }
   0xb   :  { %p104_p6 = por %p103_p5, %p102_p4 }
   0xd   :  { %p105_p7 = pnand %p104_p6, %p98_p3 }
   0xf   :  { %108 = shalt.err (!%p105_p7)
}
  0x10   :  { %18 = dma.hbm_to_vmem [thread:$0]  %s168_s0, 32, %s16_s10, [#allocation4]  }
  0x11   :  { %119 = dma.done.wait [#allocation4], 32  }
  0x12   :  { %120 = vsyncadd [#allocation4], 4294967264  ;;  %v124_v0 = vmov 0.0   ;;  %v29_v1 = vld [vmem:[#allocation3] sm:$0x3]  ;;  %vm50_vm0 = vcmask 1041408  }
  0x13   :  { %28 = vst [vmem:[#allocation2] sm:$0x3] %v124_v0  ;;  %v32_v2 = vadd.f32 1e-08, %v29_v1  ;;  %v37_v3 = vsub.f32 1.0, %v29_v1  ;;  %s109_s25 = scalar_lea.hbm %s170_s2, 16 }
  0x14   :  { %v30_v5 = vld [vmem:[%s169_s1] sm:$0x3]  ;;  %p110_p8 = scmp.ne.s32.totalorder %s170_s2, %s109_s25  ;;  %p113_p9 = scmp.lt.u32.totalorder %s109_s25, %s170_s2 }
  0x15   :  { %83 = vlog2.f32 %v32_v2  ;;  %v38_v4 = vadd.f32 1e-08, %v37_v3  ;;  %v31_v6 = vsub.f32 0.0, %v30_v5  ;;  %v36_v9 = vsub.f32 1.0, %v30_v5 }
  0x16   :  { %p115_p10 = pnand %p113_p9, %p110_p8 }
  0x17   :  { %85 = vlog2.f32 %v38_v4 }
  0x1a   :  { %v43_v14 = vld [vmem:[#allocation2] sm:$0x3] }
  0x1f   :  { %v84_v7 = vpop.eup %83 }
  0x20   :  { %v34_v8 = vmul.f32 0.6931472, %v84_v7 }
  0x21   :  { %v86_v10 = vpop.eup %85 }
  0x22   :  { %v35_v11 = vmul.f32 %v34_v8, %v31_v6  ;;  %v40_v12 = vmul.f32 0.6931472, %v86_v10 }
  0x24   :  { %v41_v13 = vmul.f32 %v40_v12, %v36_v9 }
  0x26   :  { %v42_v15 = vsub.f32 %v35_v11, %v41_v13 }
  0x28   :  { %v44_v16 = vadd.f32 %v43_v14, %v42_v15 }
  0x2a   :  { %45 = vst [vmem:[#allocation2] sm:$0x3] %v44_v16 }
  0x31   :  { %v49_v17 = vld [vmem:[#allocation2] sm:$0x3] }
  0x32   :  { %v51_v18 = vsel %vm50_vm0, %v49_v17, 0.0 }
  0x33   :  { %52 = vadd.xlane.f32.xlu0 %v51_v18 }
  0xc0   :  { %v53_v19 = vpop.xlane.xlu0 %52 }
  0xc1   :  { %v54_v20 = vrot.slane %v53_v19, 4 }
  0xc3   :  { %v55_v21 = vadd.f32 %v54_v20, %v53_v19 }
  0xc5   :  { %v56_v22 = vrot.slane %v55_v21, 2 }
  0xc7   :  { %v57_v23 = vadd.f32 %v56_v22, %v55_v21 }
  0xc9   :  { %v58_v24 = vrot.slane %v57_v23, 1 }
  0xcb   :  { %v59_v25 = vadd.f32 %v58_v24, %v57_v23 }
  0xcd   :  { %78 = vpush %v59_v25 }
  0xfe   :  { %s79_s0 = spop %78 }
  0xff   :  { %s61_s1 = smul.f32 0.00390625, %s79_s0 }
 0x101   :  { %63 = sst [smem:[#allocation6]] %s61_s1 }
 0x102   :  { %118 = shalt.err (!%p115_p10)
}
 0x103   :  { %s125_s30 = smov [#allocation6]  }
 0x104   :  { %71 = dma.smem_to_hbm %s125_s30, 16, %s170_s2, [#allocation5]  }
 0x105   :  { %121 = dma.done.wait [#allocation5], 16  }
 0x106   :  { %122 = vsyncadd [#allocation5], 4294967280 }
 0x107   :  { %75 = sfence }
 0x108   :  { %76 = vsyncpa [#allocation4], 1 }
 0x109   :  { %77 = vsyncpa [#allocation5], 1 }

</bundles_post_ra>
